<compile_context>
chip_gen: v7x
topology: tpu7x:2x2x1
jax: 0.10.0
libtpu: 0.0.40
codegen_flags: <defaults>
</compile_context>

<pallas_src>
import numpy as np
import jax
import jax.numpy as jnp
from jax.experimental import pallas as pl
from jax.experimental.pallas import tpu as pltpu

H = 8          # image height
W = 8          # image width
C = 2          # channels (beta.shape[1])
K = 6          # ground-truth bars per diagram
# Max #bars for an 8x8 grid: dim-0 <= 63 merges, dim-1 <= 98 triangles, so 128
# is the smallest safe lane-dense padding for the COMPUTED side (lanes).
NPAD = 128     # padded #computed bars (lane axis of the cost matrix)
# Ground-truth side never exceeds K = 6 bars; pad to one sublane group of 8.
MPAD = 8       # padded #ground-truth bars (sublane axis of the cost matrix)


# ---------------------------------------------------------------------------
# Pallas kernels (all grid-less: full arrays live in VMEM, single invocation)
# ---------------------------------------------------------------------------
def _filt_kernel(x_ref, o_ref):
    """Superlevel filtration values (min over incident vertices) for all edges /
    triangles of the Freudenthal triangulation, for ALL images at once.

    x_ref: (B, H, W) channel images.
    o_ref: (5, B, H, W) packed families [eh, ev, ed, tu, tl].

    The neighbour shifts are computed in-kernel (static slices + concat; no
    extra HBM inputs / DMA streams).  Wrapped last-row / last-column entries
    are garbage by construction and are NEVER read by the host pairing.
    """
    x = x_ref[...]                        # (B, H, W)
    xr = jnp.roll(x, -1, axis=2)          # x[r, c+1]   (last col wraps; unused)
    xd = jnp.roll(x, -1, axis=1)          # x[r+1, c]   (last row wraps; unused)
    xdr = jnp.roll(xd, -1, axis=2)        # x[r+1, c+1]
    o_ref[0] = jnp.minimum(x, xr)                       # horizontal edge
    o_ref[1] = jnp.minimum(x, xd)                       # vertical edge
    o_ref[2] = jnp.minimum(x, xdr)                      # diagonal edge
    o_ref[3] = jnp.minimum(jnp.minimum(x, xr), xdr)     # upper triangle
    o_ref[4] = jnp.minimum(jnp.minimum(x, xd), xdr)     # lower triangle


@jax.jit
def filt_values_batched(imgs):
    """imgs: (B, H, W) -> (5, B, H, W) packed filtration values, one call."""
    b, hh, ww = imgs.shape
    return pl.pallas_call(
        _filt_kernel,
        out_shape=jax.ShapeDtypeStruct((5, b, hh, ww), jnp.float32),
    )(imgs)


def _cost_kernel(a_ref, g_ref, c_ref):
    """c[s, j, i] = || gt_bar_j - computed_bar_i ||_2 for every diagram pair.

    a_ref: (S, 2, NPAD) computed diagrams, births on row 0 / deaths on row 1,
           bars on the LANE axis (lane-dense, no per-bar slice copies).
    g_ref: (S, MPAD, 2) ground-truth diagrams, bars on the SUBLANE axis.
    c_ref: (S, MPAD, NPAD) lane-dense cost slab (last dim = 128 -> unmasked vst).

    The sqrt is kept on purpose: the Hungarian matching must see the same L2
    metric as the reference (scipy on torch.norm distances).
    """
    ab = a_ref[:, 0:1, :]      # (S, 1, NPAD) computed births
    ad = a_ref[:, 1:2, :]      # (S, 1, NPAD) computed deaths
    gb = g_ref[:, :, 0:1]      # (S, MPAD, 1) ground-truth births
    gd = g_ref[:, :, 1:2]      # (S, MPAD, 1) ground-truth deaths
    db = gb - ab               # broadcast -> (S, MPAD, NPAD)
    dd = gd - ad
    c_ref[...] = jnp.sqrt(db * db + dd * dd)


@jax.jit
def pairwise_cost_batched(a_pad, g_pad):
    """a_pad: (S, 2, NPAD), g_pad: (S, MPAD, 2) -> (S, MPAD, NPAD) costs."""
    s, _, npad = a_pad.shape
    mpad = g_pad.shape[1]
    return pl.pallas_call(
        _cost_kernel,
        out_shape=jax.ShapeDtypeStruct((s, mpad, npad), jnp.float32),
    )(a_pad, g_pad)


def _diag_l2_kernel(x_ref, y_ref, o_ref):
    """o[s] = || x[:, s, :] - y[:, s, :] ||_2 for all S diagram pairs at once.
    Padding columns are zero in BOTH x and y, so no mask is needed."""
    d0 = x_ref[0] - y_ref[0]                                  # (S, NPAD) births
    d1 = x_ref[1] - y_ref[1]                                  # (S, NPAD) deaths
    ssq = jnp.sum(d0 * d0 + d1 * d1, axis=1, keepdims=True)   # (S, 1)
    o_ref[...] = jnp.sqrt(ssq)


@jax.jit
def diagram_l2_batched(x_pad, y_pad):
    """x_pad, y_pad: (2, S, NPAD) lane-major diagrams -> (S, 1) norms."""
    s = x_pad.shape[1]
    return pl.pallas_call(
        _diag_l2_kernel,
        out_shape=jax.ShapeDtypeStruct((s, 1), jnp.float32),
    )(x_pad, y_pad)


# ---------------------------------------------------------------------------
# Host-side combinatorial pieces (no clean Pallas equivalent)
# ---------------------------------------------------------------------------
def _superlevel_persistence(img, eh, ev, ed, tu, tl):
    # TODO(synk): LevelSetLayer2D's persistence pairing (union-find + Z/2
    # boundary-matrix reduction) is inherently sequential/combinatorial; it runs
    # on host using the simplex filtration values produced by the Pallas kernel.
    Hh, Ww = img.shape
    vid = lambda r, c: r * Ww + c

    edges = []  # (value, u, v)
    for r in range(Hh):
        for c in range(Ww - 1):
            edges.append((float(eh[r, c]), vid(r, c), vid(r, c + 1)))
    for r in range(Hh - 1):
        for c in range(Ww):
            edges.append((float(ev[r, c]), vid(r, c), vid(r + 1, c)))
    for r in range(Hh - 1):
        for c in range(Ww - 1):
            edges.append((float(ed[r, c]), vid(r, c), vid(r + 1, c + 1)))

    order = sorted(range(len(edges)), key=lambda k: -edges[k][0])
    edge_by_rank = [edges[k] for k in order]
    rank_of = {}
    for rnk, (_, u, v) in enumerate(edge_by_rank):
        rank_of[(min(u, v), max(u, v))] = rnk

    # dim-0: union-find over superlevel sets (edges in decreasing value order).
    parent = list(range(Hh * Ww))
    birth = [float(img[r, c]) for r in range(Hh) for c in range(Ww)]

    def find(x):
        while parent[x] != x:
            parent[x] = parent[parent[x]]
            x = parent[x]
        return x

    dgm0 = []
    for val, u, v in edge_by_rank:
        ru, rv = find(u), find(v)
        if ru == rv:
            continue
        if birth[ru] < birth[rv]:
            ru, rv = rv, ru
        dgm0.append((birth[rv], val))   # younger component dies (elder rule)
        parent[rv] = ru

    # dim-1: Z/2 reduction of triangle boundary columns.
    triangles = []
    for r in range(Hh - 1):
        for c in range(Ww - 1):
            a, b = vid(r, c), vid(r, c + 1)
            d2, e2 = vid(r + 1, c + 1), vid(r + 1, c)
            tri_u = (rank_of[(min(a, b), max(a, b))],
                     rank_of[(min(b, d2), max(b, d2))],
                     rank_of[(min(a, d2), max(a, d2))])
            triangles.append((float(tu[r, c]), tri_u))
            tri_l = (rank_of[(min(a, e2), max(a, e2))],
                     rank_of[(min(e2, d2), max(e2, d2))],
                     rank_of[(min(a, d2), max(a, d2))])
            triangles.append((float(tl[r, c]), tri_l))

    pivot_cols = {}
    dgm1 = []
    for tval, eranks in sorted(triangles, key=lambda t: -t[0]):
        col = set(eranks)
        while col:
            low = max(col)
            if low in pivot_cols:
                col ^= pivot_cols[low]
            else:
                pivot_cols[low] = set(col)
                dgm1.append((edge_by_rank[low][0], tval))
                break

    dgm0 = np.asarray(dgm0, dtype=np.float32).reshape(-1, 2)
    dgm1 = np.asarray(dgm1, dtype=np.float32).reshape(-1, 2)
    return dgm0, dgm1


def _linear_sum_assignment(cost):
    # TODO(synk): scipy.optimize.linear_sum_assignment equivalent (Hungarian with
    # potentials); combinatorial, runs on host exactly as the reference module does.
    cost = np.asarray(cost, dtype=np.float64)
    n, m = cost.shape
    if n == 0 or m == 0:
        return np.empty(0, dtype=int), np.empty(0, dtype=int)
    transposed = False
    if n > m:
        cost = cost.T
        n, m = m, n
        transposed = True
    INF = float("inf")
    u = [0.0] * (n + 1)
    v = [0.0] * (m + 1)
    p = [0] * (m + 1)
    way = [0] * (m + 1)
    for i in range(1, n + 1):
        p[0] = i
        j0 = 0
        minv = [INF] * (m + 1)
        used = [False] * (m + 1)
        while True:
            used[j0] = True
            i0 = p[j0]
            delta = INF
            j1 = 0
            for j in range(1, m + 1):
                if not used[j]:
                    cur = cost[i0 - 1, j - 1] - u[i0] - v[j]
                    if cur < minv[j]:
                        minv[j] = cur
                        way[j] = j0
                    if minv[j] < delta:
                        delta = minv[j]
                        j1 = j
            for j in range(m + 1):
                if used[j]:
                    u[p[j]] += delta
                    v[j] -= delta
                else:
                    minv[j] -= delta
            j0 = j1
            if p[j0] == 0:
                break
        while True:
            j1 = way[j0]
            p[j0] = p[j1]
            j0 = j1
            if j0 == 0:
                break
    row_to_col = np.zeros(n, dtype=int)
    for j in range(1, m + 1):
        if p[j] != 0:
            row_to_col[p[j] - 1] = j - 1
    rows = np.arange(n)
    if transposed:
        return row_to_col, rows
    return rows, row_to_col


def _filtration(info):
    """Keep only finite, nonzero-persistence bars (mirrors TopLoss.filtration)."""
    info = np.asarray(info, dtype=np.float32).reshape(-1, 2)
    if info.shape[0] == 0:
        return info
    end, start = info[:, 0], info[:, 1]
    info = info[(np.abs(end) != np.inf) & (np.abs(start) != np.inf)]
    if info.shape[0] == 0:
        return info
    end, start = info[:, 0], info[:, 1]
    return info[(end - start) != 0]


# ---------------------------------------------------------------------------
# TopLoss.forward
# ---------------------------------------------------------------------------
def top_loss_forward(beta, ground, z, f):
    """JAX/Pallas re-implementation of TopLoss.forward.
    `ground` is unused, exactly as in the reference module."""
    del ground
    beta_dev = jnp.asarray(beta, dtype=jnp.float32)
    n_outer, n_ch, hh, ww = beta_dev.shape
    n_img = n_outer * n_ch
    imgs_dev = beta_dev.reshape(n_img, hh, ww)      # device-side reshape only

    # ---- Stage 1 (Pallas, one grid-less call): simplex filtration values.
    filt_np = np.asarray(filt_values_batched(imgs_dev))   # (5, n_img, H, W)
    imgs = np.asarray(imgs_dev)                            # host copy for pairing
    z_np = np.asarray(z, dtype=np.float32)
    f_np = np.asarray(f, dtype=np.float32)

    # ---- Stage 2 (host): persistence pairing + bar filtering for all diagrams.
    reduced = []       # computed diagrams; slot 2k -> dim-0, 2k+1 -> dim-1
    reduced_g = []     # matching ground-truth diagrams (z for dim-0, f for dim-1)
    for k in range(n_img):
        i, j = divmod(k, n_ch)
        eh, ev, ed, tu, tl = filt_np[:, k]
        dgm0, dgm1 = _superlevel_persistence(imgs[k], eh, ev, ed, tu, tl)
        reduced.append(_filtration(dgm0))
        reduced_g.append(_filtration(z_np[i, j]))
        reduced.append(_filtration(dgm1))
        reduced_g.append(_filtration(f_np[i, j]))
    n_dgm = len(reduced)                       # = 2 * n_img

    # ---- Stage 3 (Pallas, one grid-less call): all pairwise cost matrices.
    # Computed bars lane-dense (S, 2, NPAD); ground-truth bars on sublanes.
    a_pad = np.zeros((n_dgm, 2, NPAD), np.float32)
    g_pad = np.zeros((n_dgm, MPAD, 2), np.float32)
    for s in range(n_dgm):
        n, m = reduced[s].shape[0], reduced_g[s].shape[0]
        assert n <= NPAD and m <= MPAD
        if n:
            a_pad[s, 0, :n] = reduced[s][:, 0]
            a_pad[s, 1, :n] = reduced[s][:, 1]
        if m:
            g_pad[s, :m] = reduced_g[s]
    cost_np = np.asarray(
        pairwise_cost_batched(jnp.asarray(a_pad), jnp.asarray(g_pad)))  # (S,8,128)

    # ---- Stage 4 (host): Hungarian assignment + ordered ground truth.
    # Lane-major (birth row / death row) padded diagrams; padding is zero in
    # BOTH x and y so the mask-free L2 kernel is exact.
    x_pad = np.zeros((2, n_dgm, NPAD), np.float32)
    y_pad = np.zeros((2, n_dgm, NPAD), np.float32)
    for s in range(n_dgm):
        red, red_g = reduced[s], reduced_g[s]
        n, m = red.shape[0], red_g.shape[0]
        if n == 0:
            continue                           # empty diagram contributes zero loss
        ordered = np.zeros((n, 2), np.float32)
        row_mean = red.mean(axis=1)
        ordered[:, 0] = row_mean
        ordered[:, 1] = row_mean
        if m > 0:
            # cost layout is [gt bar j, computed bar i]; transpose the valid
            # (m, n) corner so rows = computed bars, as the reference expects.
            p_ind, g_ind = _linear_sum_assignment(cost_np[s, :m, :n].T)
            ordered[p_ind] = red_g[g_ind]
        x_pad[0, s, :n] = red[:, 0]
        x_pad[1, s, :n] = red[:, 1]
        y_pad[0, s, :n] = ordered[:, 0]
        y_pad[1, s, :n] = ordered[:, 1]

    # ---- Stage 5 (Pallas, one grid-less call): ||reduced - ordered_gt||_2.
    norms = diagram_l2_batched(jnp.asarray(x_pad), jnp.asarray(y_pad))   # (n_dgm, 1)

    # Each channel contributes zero_loss + one_loss; mean over the 2*C channels.
    return jnp.sum(norms) / n_img


if __name__ == "__main__":
    key = jax.random.PRNGKey(0)
    k1, k2, k3, k4 = jax.random.split(key, 4)
    beta = jax.random.normal(k1, (2, C, H, W), dtype=jnp.float32)
    ground = jax.random.normal(k2, (2, C, H, W), dtype=jnp.float32)   # unused by forward
    z = jax.random.normal(k3, (2, C, K, 2), dtype=jnp.float32)        # dim-0 ground-truth bars
    f = jax.random.normal(k4, (2, C, K, 2), dtype=jnp.float32)        # dim-1 ground-truth bars

    loss = top_loss_forward(beta, ground, z, f)
    jax.block_until_ready(loss)
    print("KERNEL_OK")
</pallas_src>

<mosaic_0001>
module attributes {stable_mosaic.version = 11 : i64} {
  func.func @_filt_kernel(%arg0: memref<4x8x8xf32, #tpu.memory_space<vmem>>, %arg1: memref<5x4x8x8xf32, #tpu.memory_space<vmem>>) attributes {dimension_semantics = [], scalar_prefetch = 0 : i64, scratch_operands = 0 : i64, tpu.core_type = #tpu.core_type<tc>} {
    %c0 = arith.constant 0 : index
    %c0_0 = arith.constant 0 : index
    %c0_1 = arith.constant 0 : index
    %0 = vector.load %arg0[%c0, %c0_0, %c0_1] : memref<4x8x8xf32, #tpu.memory_space<vmem>>, vector<4x8x8xf32>
    %1 = vector.extract_strided_slice %0 {offsets = [0, 0, 1], sizes = [4, 8, 7], strides = [1, 1, 1]} : vector<4x8x8xf32> to vector<4x8x7xf32>
    %2 = vector.extract_strided_slice %0 {offsets = [0, 0, 0], sizes = [4, 8, 1], strides = [1, 1, 1]} : vector<4x8x8xf32> to vector<4x8x1xf32>
    %3 = tpu.concatenate %1, %2 in 2 : vector<4x8x7xf32>, vector<4x8x1xf32> -> vector<4x8x8xf32>
    %4 = vector.extract_strided_slice %0 {offsets = [0, 1, 0], sizes = [4, 7, 8], strides = [1, 1, 1]} : vector<4x8x8xf32> to vector<4x7x8xf32>
    %5 = vector.extract_strided_slice %0 {offsets = [0, 0, 0], sizes = [4, 1, 8], strides = [1, 1, 1]} : vector<4x8x8xf32> to vector<4x1x8xf32>
    %6 = tpu.concatenate %4, %5 in 1 : vector<4x7x8xf32>, vector<4x1x8xf32> -> vector<4x8x8xf32>
    %7 = vector.extract_strided_slice %6 {offsets = [0, 0, 1], sizes = [4, 8, 7], strides = [1, 1, 1]} : vector<4x8x8xf32> to vector<4x8x7xf32>
    %8 = vector.extract_strided_slice %6 {offsets = [0, 0, 0], sizes = [4, 8, 1], strides = [1, 1, 1]} : vector<4x8x8xf32> to vector<4x8x1xf32>
    %9 = tpu.concatenate %7, %8 in 2 : vector<4x8x7xf32>, vector<4x8x1xf32> -> vector<4x8x8xf32>
    %10 = arith.minimumf %0, %3 : vector<4x8x8xf32>
    %c0_2 = arith.constant 0 : index
    %c0_3 = arith.constant 0 : index
    %c0_4 = arith.constant 0 : index
    %c0_5 = arith.constant 0 : index
    %11 = vector.load %arg1[%c0_2, %c0_3, %c0_4, %c0_5] : memref<5x4x8x8xf32, #tpu.memory_space<vmem>>, vector<1x4x8x8xf32>
    %12 = vector.shape_cast %11 : vector<1x4x8x8xf32> to vector<4x8x8xf32>
    %13 = vector.shape_cast %10 : vector<4x8x8xf32> to vector<1x4x8x8xf32>
    tpu.vector_store %arg1[%c0_2, %c0_3, %c0_4, %c0_5], %13 {strides = array<i32>} : memref<5x4x8x8xf32, #tpu.memory_space<vmem>>, vector<1x4x8x8xf32>,
    %14 = arith.minimumf %0, %6 : vector<4x8x8xf32>
    %c1 = arith.constant 1 : index
    %c0_6 = arith.constant 0 : index
    %c0_7 = arith.constant 0 : index
    %c0_8 = arith.constant 0 : index
    %15 = vector.load %arg1[%c1, %c0_6, %c0_7, %c0_8] : memref<5x4x8x8xf32, #tpu.memory_space<vmem>>, vector<1x4x8x8xf32>
    %16 = vector.shape_cast %15 : vector<1x4x8x8xf32> to vector<4x8x8xf32>
    %17 = vector.shape_cast %14 : vector<4x8x8xf32> to vector<1x4x8x8xf32>
    tpu.vector_store %arg1[%c1, %c0_6, %c0_7, %c0_8], %17 {strides = array<i32>} : memref<5x4x8x8xf32, #tpu.memory_space<vmem>>, vector<1x4x8x8xf32>,
    %18 = arith.minimumf %0, %9 : vector<4x8x8xf32>
    %c2 = arith.constant 2 : index
    %c0_9 = arith.constant 0 : index
    %c0_10 = arith.constant 0 : index
    %c0_11 = arith.constant 0 : index
    %19 = vector.load %arg1[%c2, %c0_9, %c0_10, %c0_11] : memref<5x4x8x8xf32, #tpu.memory_space<vmem>>, vector<1x4x8x8xf32>
    %20 = vector.shape_cast %19 : vector<1x4x8x8xf32> to vector<4x8x8xf32>
    %21 = vector.shape_cast %18 : vector<4x8x8xf32> to vector<1x4x8x8xf32>
    tpu.vector_store %arg1[%c2, %c0_9, %c0_10, %c0_11], %21 {strides = array<i32>} : memref<5x4x8x8xf32, #tpu.memory_space<vmem>>, vector<1x4x8x8xf32>,
    %22 = arith.minimumf %0, %3 : vector<4x8x8xf32>
    %23 = arith.minimumf %22, %9 : vector<4x8x8xf32>
    %c3 = arith.constant 3 : index
    %c0_12 = arith.constant 0 : index
    %c0_13 = arith.constant 0 : index
    %c0_14 = arith.constant 0 : index
    %24 = vector.load %arg1[%c3, %c0_12, %c0_13, %c0_14] : memref<5x4x8x8xf32, #tpu.memory_space<vmem>>, vector<1x4x8x8xf32>
    %25 = vector.shape_cast %24 : vector<1x4x8x8xf32> to vector<4x8x8xf32>
    %26 = vector.shape_cast %23 : vector<4x8x8xf32> to vector<1x4x8x8xf32>
    tpu.vector_store %arg1[%c3, %c0_12, %c0_13, %c0_14], %26 {strides = array<i32>} : memref<5x4x8x8xf32, #tpu.memory_space<vmem>>, vector<1x4x8x8xf32>,
    %27 = arith.minimumf %0, %6 : vector<4x8x8xf32>
    %28 = arith.minimumf %27, %9 : vector<4x8x8xf32>
    %c4 = arith.constant 4 : index
    %c0_15 = arith.constant 0 : index
    %c0_16 = arith.constant 0 : index
    %c0_17 = arith.constant 0 : index
    %29 = vector.load %arg1[%c4, %c0_15, %c0_16, %c0_17] : memref<5x4x8x8xf32, #tpu.memory_space<vmem>>, vector<1x4x8x8xf32>
    %30 = vector.shape_cast %29 : vector<1x4x8x8xf32> to vector<4x8x8xf32>
    %31 = vector.shape_cast %28 : vector<4x8x8xf32> to vector<1x4x8x8xf32>
    tpu.vector_store %arg1[%c4, %c0_15, %c0_16, %c0_17], %31 {strides = array<i32>} : memref<5x4x8x8xf32, #tpu.memory_space<vmem>>, vector<1x4x8x8xf32>,
    return
  }
}

</mosaic_0001>

<bundles_post_ra>
// kernel: filt_values_batched.1
= control target key start
LH: loop header
LB: loop body
LE: loop exit
PB: predicated region body
PF: predicated region fallthrough
CT: control target
= control target key end

     0   :  { %6 = vsyncpa [#allocation3], 0  ;;  %s339_s0 = inlined_call_operand.hbm [shape: f32[4,8,8], index: 0, kind: input, shape index: {}]   ;;  %s340_s1 = inlined_call_operand.hbm [shape: f32[5,4,8,8], index: 1, kind: output, shape index: {}]  }
   0x1   :  { %7 = vsyncpa [#allocation4], 0  ;;  %s221_s6 = smov [#allocation2]   ;;  %s173_s10 = scalar_lea.hbm %s339_s0, 512 }
   0x2   :  { %s13_s7 = sshll.u32 %s221_s6, 4  ;;  %p174_p0 = scmp.ne.s32.totalorder %s339_s0, %s173_s10  ;;  %s14_s7 = int_to_ptr.vmem [resolvable:$true] %s13_s7 }
   0x3   :  { %p177_p1 = scmp.lt.u32.totalorder %s173_s10, %s339_s0 }
   0x5   :  { %p179_p2 = pnand %p177_p1, %p174_p0 }
   0x7   :  { %182 = shalt.err (!%p179_p2)
}
   0x8   :  { %s183_s15 = scalar_lea.vmem %s14_s7, 512  ;;  %p188_p4 = scmp.lt.s32.totalorder %s14_s7, %s14_s7 }
   0x9   :  { %p184_p3 = scmp.ne.s32.totalorder %s14_s7, %s183_s15  ;;  %p189_p5 = scmp.lt.s32.totalorder %s183_s15, %s183_s15 }
   0xb   :  { %p190_p6 = por %p189_p5, %p188_p4 }
   0xd   :  { %p191_p7 = pnand %p190_p6, %p184_p3 }
   0xf   :  { %194 = shalt.err (!%p191_p7)
}
  0x10   :  { %s222_s16 = smov 128   ;;  %s223_s17 = smov 8  }
  0x11   :  { %19 = dma.hbm_to_vmem [thread:$0]  %s339_s0, 512, %s14_s7, [#allocation3], %s222_s16, %s222_s16, %s223_s17  }
  0x12   :  { %217 = dma.done.wait [#allocation3], 512  }
  0x13   :  { %218 = vsyncadd [#allocation3], 4294966784  ;;  %v252_v0 = vld [vmem:[#allocation2 + $0x10] sm:$0xff]  ;;  %v254_v1 = vld [vmem:[#allocation2] sm:$0xff]  ;;  %s224_s20 = smov 127   ;;  %s225_s0 = smov 7  }
  0x14   :  { %35 = vrot.lane.b32.xlu1 %v252_v0, %s224_s20  ;;  %31 = vrot.lane.b32.xlu0 %v254_v1, %s224_s20  ;;  %v258_v2 = vld [vmem:[#allocation2 + $0x18] sm:$0xff]  ;;  %v260_v3 = vld [vmem:[#allocation2 + $0x8] sm:$0xff]  ;;  %v60_v5 = vrot.slane %v254_v1, 1  ;;  %vm109_vm0 = vcmask 64512   ;;  %v62_v9 = vrot.slane %v252_v0, 1  ;;  %vm55_vm1 = vcmask 56320  }
  0x15   :  { %v61_v4 = vrot.slane %v260_v3, 1  ;;  %v63_v8 = vrot.slane %v258_v2, 1  ;;  %s226_s21 = smov [#allocation5]  }
  0x16   :  { %v270_v7 = vmin.f32 %v254_v1, %v60_v5  ;;  %v283_v11 = vmin.f32 %v252_v0, %v62_v9  ;;  %s155_s22 = sshll.u32 %s226_s21, 4  ;;  %s156_s22 = int_to_ptr.vmem [resolvable:$true] %s155_s22 }
  0x17   :  { %v115_v6 = vmin.f32 %v260_v3, %v61_v4  ;;  %v280_v10 = vmin.f32 %v258_v2, %v63_v8  ;;  %s195_s23 = scalar_lea.vmem %s156_s22, 2560  ;;  %p200_p9 = scmp.lt.s32.totalorder %s156_s22, %s156_s22 }
  0x18   :  { %37 = vrot.lane.b32.xlu1 %v258_v2, %s224_s20  ;;  %33 = vrot.lane.b32.xlu0 %v260_v3, %s224_s20  ;;  %119 = vst.msk [vmem:[#allocation5 + $0x20] sm:$0xff] %vm109_vm0, %v270_v7  ;;  %121 = vst.msk [vmem:[#allocation5 + $0x30] sm:$0xff] %vm109_vm0, %v283_v11  ;;  %p196_p8 = scmp.ne.s32.totalorder %s156_s22, %s195_s23  ;;  %p201_p10 = scmp.lt.s32.totalorder %s195_s23, %s195_s23 }
  0x19   :  { %120 = vst.msk [vmem:[#allocation5 + $0x28] sm:$0xff] %vm109_vm0, %v115_v6  ;;  %122 = vst.msk [vmem:[#allocation5 + $0x38] sm:$0xff] %vm109_vm0, %v280_v10 }
  0x1a   :  { %p202_p11 = por %p201_p10, %p200_p9 }
  0x1c   :  { %45 = vrot.lane.b32.xlu1 %v260_v3, %s225_s0  ;;  %43 = vrot.lane.b32.xlu0 %v254_v1, %s225_s0  ;;  %p203_p12 = pnand %p202_p11, %p196_p8 }
  0x20   :  { %49 = vrot.lane.b32.xlu1 %v258_v2, %s225_s0  ;;  %47 = vrot.lane.b32.xlu0 %v252_v0, %s225_s0 }
  0x24   :  { %79 = vrot.lane.b32.xlu1 %v61_v4, %s224_s20  ;;  %77 = vrot.lane.b32.xlu0 %v60_v5, %s224_s20 }
  0x28   :  { %83 = vrot.lane.b32.xlu1 %v63_v8, %s224_s20  ;;  %81 = vrot.lane.b32.xlu0 %v62_v9, %s224_s20 }
  0x2c   :  { %91 = vrot.lane.b32.xlu1 %v61_v4, %s225_s0  ;;  %89 = vrot.lane.b32.xlu0 %v60_v5, %s225_s0 }
  0x30   :  { %95 = vrot.lane.b32.xlu1 %v63_v8, %s225_s0  ;;  %93 = vrot.lane.b32.xlu0 %v62_v9, %s225_s0 }
  0x86   :  { %v36_v12 = vpop.permute.xlu1 %35  ;;  %v32_v13 = vpop.permute.xlu0 %31 }
  0x8a   :  { %v38_v14 = vpop.permute.xlu1 %37  ;;  %v34_v15 = vpop.permute.xlu0 %33 }
  0x8e   :  { %v46_v16 = vpop.permute.xlu1 %45  ;;  %v44_v17 = vpop.permute.xlu0 %43 }
  0x8f   :  { %v57_v18 = vsel %vm55_vm1, %v34_v15, %v46_v16  ;;  %v56_v19 = vsel %vm55_vm1, %v32_v13, %v44_v17 }
  0x90   :  { %v106_v20 = vmin.f32 %v260_v3, %v57_v18  ;;  %v105_v21 = vmin.f32 %v254_v1, %v56_v19 }
  0x92   :  { %111 = vst.msk [vmem:[#allocation5 + $0x8] sm:$0xff] %vm109_vm0, %v106_v20  ;;  %110 = vst.msk [vmem:[#allocation5] sm:$0xff] %vm109_vm0, %v105_v21  ;;  %v50_v22 = vpop.permute.xlu1 %49  ;;  %v48_v23 = vpop.permute.xlu0 %47 }
  0x93   :  { %v59_v24 = vsel %vm55_vm1, %v38_v14, %v50_v22  ;;  %v58_v25 = vsel %vm55_vm1, %v36_v12, %v48_v23 }
  0x94   :  { %v108_v26 = vmin.f32 %v258_v2, %v59_v24  ;;  %v107_v27 = vmin.f32 %v252_v0, %v58_v25 }
  0x96   :  { %113 = vst.msk [vmem:[#allocation5 + $0x18] sm:$0xff] %vm109_vm0, %v108_v26  ;;  %112 = vst.msk [vmem:[#allocation5 + $0x10] sm:$0xff] %vm109_vm0, %v107_v27  ;;  %v80_v28 = vpop.permute.xlu1 %79  ;;  %v78_v29 = vpop.permute.xlu0 %77 }
  0x9a   :  { %v84_v30 = vpop.permute.xlu1 %83  ;;  %v82_v31 = vpop.permute.xlu0 %81 }
  0x9e   :  { %v92_v32 = vpop.permute.xlu1 %91  ;;  %v90_v33 = vpop.permute.xlu0 %89 }
  0x9f   :  { %v102_v34 = vsel %vm55_vm1, %v80_v28, %v92_v32  ;;  %v101_v35 = vsel %vm55_vm1, %v78_v29, %v90_v33 }
  0xa0   :  { %v124_v36 = vmin.f32 %v260_v3, %v102_v34  ;;  %v133_v37 = vmin.f32 %v106_v20, %v102_v34  ;;  %v142_v38 = vmin.f32 %v115_v6, %v102_v34  ;;  %v123_v39 = vmin.f32 %v254_v1, %v101_v35 }
  0xa1   :  { %v132_v40 = vmin.f32 %v105_v21, %v101_v35  ;;  %v141_v41 = vmin.f32 %v270_v7, %v101_v35 }
  0xa2   :  { %129 = vst.msk [vmem:[#allocation5 + $0x48] sm:$0xff] %vm109_vm0, %v124_v36  ;;  %138 = vst.msk [vmem:[#allocation5 + $0x68] sm:$0xff] %vm109_vm0, %v133_v37  ;;  %v96_v42 = vpop.permute.xlu1 %95  ;;  %v94_v43 = vpop.permute.xlu0 %93 }
  0xa3   :  { %147 = vst.msk [vmem:[#allocation5 + $0x88] sm:$0xff] %vm109_vm0, %v142_v38  ;;  %128 = vst.msk [vmem:[#allocation5 + $0x40] sm:$0xff] %vm109_vm0, %v123_v39  ;;  %v104_v44 = vsel %vm55_vm1, %v84_v30, %v96_v42  ;;  %v103_v45 = vsel %vm55_vm1, %v82_v31, %v94_v43 }
  0xa4   :  { %137 = vst.msk [vmem:[#allocation5 + $0x60] sm:$0xff] %vm109_vm0, %v132_v40  ;;  %146 = vst.msk [vmem:[#allocation5 + $0x80] sm:$0xff] %vm109_vm0, %v141_v41  ;;  %v126_v46 = vmin.f32 %v258_v2, %v104_v44  ;;  %v135_v47 = vmin.f32 %v108_v26, %v104_v44  ;;  %v144_v48 = vmin.f32 %v280_v10, %v104_v44 }
  0xa5   :  { %v125_v49 = vmin.f32 %v252_v0, %v103_v45  ;;  %v134_v50 = vmin.f32 %v107_v27, %v103_v45  ;;  %v143_v51 = vmin.f32 %v283_v11, %v103_v45 }
  0xa6   :  { %131 = vst.msk [vmem:[#allocation5 + $0x58] sm:$0xff] %vm109_vm0, %v126_v46  ;;  %140 = vst.msk [vmem:[#allocation5 + $0x78] sm:$0xff] %vm109_vm0, %v135_v47 }
  0xa7   :  { %149 = vst.msk [vmem:[#allocation5 + $0x98] sm:$0xff] %vm109_vm0, %v144_v48  ;;  %130 = vst.msk [vmem:[#allocation5 + $0x50] sm:$0xff] %vm109_vm0, %v125_v49 }
  0xa8   :  { %139 = vst.msk [vmem:[#allocation5 + $0x70] sm:$0xff] %vm109_vm0, %v134_v50  ;;  %148 = vst.msk [vmem:[#allocation5 + $0x90] sm:$0xff] %vm109_vm0, %v143_v51 }
  0xa9   :  { %206 = shalt.err (!%p203_p12)
}
  0xaa   :  { %s207_s26 = scalar_lea.hbm %s340_s1, 2560 }
  0xab   :  { %p208_p13 = scmp.ne.s32.totalorder %s340_s1, %s207_s26  ;;  %p211_p0 = scmp.lt.u32.totalorder %s207_s26, %s340_s1 }
  0xad   :  { %p213_p1 = pnand %p211_p0, %p208_p13 }
  0xaf   :  { %216 = shalt.err (!%p213_p1)
}
  0xb0   :  { %161 = dma.vmem_to_hbm [thread:$0]  %s156_s22, 2560, %s340_s1, [#allocation4], %s222_s16, %s222_s16, %s223_s17  }
  0xb1   :  { %219 = dma.done.wait [#allocation4], 2560  }
  0xb2   :  { %220 = vsyncadd [#allocation4], 4294964736 }
  0xb3   :  { %165 = vsyncpa [#allocation3], 1 }
  0xb4   :  { %166 = vsyncpa [#allocation4], 1 }

</bundles_post_ra>
